<compile_context>
chip_gen: v7x
topology: tpu7x:2x2x1
jax: 0.10.0
libtpu: 0.0.40
codegen_flags: <defaults>
</compile_context>

<pallas_src>
import functools
import itertools

import numpy as np

import jax
import jax.numpy as jnp
from jax.experimental import pallas as pl
from jax.experimental.pallas import tpu as pltpu


def _round_up(x, m):
    return (x + m - 1) // m * m


def _choose_tile_n(n, max_tile=512, min_tile=16, min_grid=4):
    """Largest power-of-two tile with >= min_grid tiles (v7x: 2 TCs stay busy)
    and <= 12.5% padded rows (memory-bound kernel: padding is wasted HBM)."""
    cands, t = [], min_tile
    while t <= max_tile:
        cands.append(t)
        t *= 2
    best = min_tile
    for t in cands:
        n_pad = _round_up(n, t)
        if n_pad // t >= min_grid and (n_pad - n) <= n_pad // 8:
            best = t
    return best


def _phys_vmem_bytes():
    try:
        return int(pltpu.get_tpu_info().vmem_capacity_bytes)
    except Exception:
        return 64 * 1024 * 1024          # v7x-safe default


def _vmem_limit(needed_bytes):
    """Scoped-VMEM limit from actual tile sizes, capped below physical VMEM."""
    return int(min(max(needed_bytes * 3 // 2 + (8 << 20), 32 << 20),
                   _phys_vmem_bytes() * 4 // 5))


# ----------------------------------------------------------------------------
# Primary path: in-kernel gather from a VMEM-resident feature table.
# Per N-tile: 27 row-gathers + 27 small MXU matmuls (f32 accumulate), fused
# BN bias, optional residual add, optional ReLU, padded-row masking.
# ----------------------------------------------------------------------------
def _gather_conv_kernel(*refs, n_valid, apply_relu, has_residual):
    if has_residual:
        nbr_ref, tab_ref, w_ref, bias_ref, res_ref, o_ref = refs
    else:
        nbr_ref, tab_ref, w_ref, bias_ref, o_ref = refs
        res_ref = None
    tile_n, c_pad = o_ref.shape
    # Up-cast the bf16 table once; row gathers then run on 32-bit rows.
    tab = tab_ref[...].astype(jnp.float32)                       # [T, c_pad]
    nbr = nbr_ref[...]                                           # [tile_n, K] int32
    acc = jnp.zeros((tile_n, c_pad), jnp.float32)
    for k in range(nbr_ref.shape[1]):                            # static unroll over 3^D offsets
        idx = nbr[:, k]                                          # [tile_n]
        valid = idx < n_valid                                    # sentinel / missing neighbour
        rows = jnp.take(tab, jnp.where(valid, idx, 0), axis=0)   # [tile_n, c_pad]
        rows = jnp.where(valid[:, None], rows, 0.0)
        acc = acc + jnp.dot(rows.astype(jnp.bfloat16), w_ref[k],
                            preferred_element_type=jnp.float32)
    out = acc + bias_ref[...]
    if res_ref is not None:
        out = out + res_ref[...].astype(jnp.float32)
    if apply_relu:
        out = jnp.maximum(out, 0.0)
    # Zero padded rows so downstream gathers / residuals see exact zeros.
    row = pl.program_id(0) * tile_n + jax.lax.broadcasted_iota(jnp.int32, (tile_n, 1), 0)
    out = jnp.where(row < n_valid, out, 0.0)
    o_ref[...] = out.astype(o_ref.dtype)


def sparse_conv_bn_gather(nbr_pad, table, w3, bias, residual=None, *, n_valid,
                          apply_relu, out_dtype, tile_n, single_buffer_consts):
    """nbr_pad [Np,K] i32, table [T,Cp] bf16 (resident), w3 [K,Cp,Cp] bf16,
    bias [1,Cp] f32, residual [Np,Cp] bf16 or None  ->  [Np,Cp] out_dtype."""
    n_pad, k_total = nbr_pad.shape
    t_rows, c_pad = table.shape
    assert n_pad % tile_n == 0
    grid = (n_pad // tile_n,)

    # Constant-index-map inputs never re-DMA; single-buffer them to halve VMEM.
    const_kw = dict(pipeline_mode=pl.Buffered(1)) if single_buffer_consts else {}
    in_specs = [
        pl.BlockSpec((tile_n, k_total), lambda i: (i, 0)),                       # nbr tile
        pl.BlockSpec((t_rows, c_pad), lambda i: (0, 0), **const_kw),             # table (resident)
        pl.BlockSpec((k_total, c_pad, c_pad), lambda i: (0, 0, 0), **const_kw),  # weights (resident)
        pl.BlockSpec((1, c_pad), lambda i: (0, 0), **const_kw),                  # bias (resident)
    ]
    args = [nbr_pad, table, w3, bias]
    if residual is not None:
        in_specs.append(pl.BlockSpec((tile_n, c_pad), lambda i: (i, 0)))
        args.append(residual)

    out_bytes = np.dtype(out_dtype).itemsize
    wbuf = 1 if single_buffer_consts else 2
    need = ((t_rows * c_pad * 2 + k_total * c_pad * c_pad * 2 + c_pad * 4) * wbuf
            + (tile_n * k_total * 4 + tile_n * c_pad * (2 + out_bytes)) * 2
            + t_rows * c_pad * 4 + 2 * tile_n * c_pad * 4)

    kernel = functools.partial(_gather_conv_kernel, n_valid=n_valid,
                               apply_relu=apply_relu,
                               has_residual=residual is not None)
    return pl.pallas_call(
        kernel,
        out_shape=jax.ShapeDtypeStruct((n_pad, c_pad), out_dtype),
        grid=grid,
        in_specs=in_specs,
        out_specs=pl.BlockSpec((tile_n, c_pad), lambda i: (i, 0)),
        compiler_params=pltpu.CompilerParams(
            dimension_semantics=("parallel",),       # N tiles shard across v7x's 2 TCs
            vmem_limit_bytes=_vmem_limit(need)),
    )(*args)


# ----------------------------------------------------------------------------
# Fallback path: XLA-side gather, K folded into the MXU contraction dim
# (the previous, known-good formulation, with bf16 gather + residual).
# ----------------------------------------------------------------------------
def _folded_conv_kernel(*refs, apply_relu, has_residual):
    if has_residual:
        xg_ref, w_ref, bias_ref, res_ref, o_ref = refs
    else:
        xg_ref, w_ref, bias_ref, o_ref = refs
        res_ref = None
    acc = jnp.dot(xg_ref[...], w_ref[...], preferred_element_type=jnp.float32)
    out = acc + bias_ref[...]
    if res_ref is not None:
        out = out + res_ref[...].astype(jnp.float32)
    if apply_relu:
        out = jnp.maximum(out, 0.0)
    o_ref[...] = out.astype(o_ref.dtype)


def sparse_conv_bn_folded(xg, w2d, bias, residual=None, *, apply_relu, out_dtype, tile_n):
    n_pad, kc_pad = xg.shape
    c_pad = w2d.shape[-1]
    assert n_pad % tile_n == 0
    grid = (n_pad // tile_n,)
    in_specs = [pl.BlockSpec((tile_n, kc_pad), lambda i: (i, 0)),
                pl.BlockSpec((kc_pad, c_pad), lambda i: (0, 0)),
                pl.BlockSpec((1, c_pad), lambda i: (0, 0))]
    args = [xg, w2d, bias]
    if residual is not None:
        in_specs.append(pl.BlockSpec((tile_n, c_pad), lambda i: (i, 0)))
        args.append(residual)
    out_bytes = np.dtype(out_dtype).itemsize
    need = ((tile_n * kc_pad * 2 + tile_n * c_pad * (2 + out_bytes)) * 2
            + (kc_pad * c_pad * 2 + c_pad * 4) * 2 + tile_n * c_pad * 4)
    kernel = functools.partial(_folded_conv_kernel, apply_relu=apply_relu,
                               has_residual=residual is not None)
    return pl.pallas_call(
        kernel,
        out_shape=jax.ShapeDtypeStruct((n_pad, c_pad), out_dtype),
        grid=grid,
        in_specs=in_specs,
        out_specs=pl.BlockSpec((tile_n, c_pad), lambda i: (i, 0)),
        compiler_params=pltpu.CompilerParams(
            dimension_semantics=("parallel",),
            vmem_limit_bytes=_vmem_limit(need)),
    )(*args)


# ----------------------------------------------------------------------------
# Parameter prep (done once) and host-side kernel-map construction.
# ----------------------------------------------------------------------------
def _fold_bn(w, gamma, beta, mean, var, eps=1e-5):
    """Fold BN scale into conv weights.  w: [K, Cin, Cout] -> scaled w, bias."""
    scale = gamma / jnp.sqrt(var + eps)
    return w * scale[None, None, :], beta - mean * scale


def _pad_bias(bias, c_pad):
    return jnp.pad(bias[None, :], ((0, 0), (0, c_pad - bias.shape[0]))).astype(jnp.float32)


def _pad_w_per_k(w, c_pad):
    k, cin, cout = w.shape
    return jnp.pad(w, ((0, 0), (0, c_pad - cin), (0, c_pad - cout))).astype(jnp.bfloat16)


def _pad_w_folded(w, kc_pad, c_pad):
    k, cin, cout = w.shape
    w2d = w.reshape(k * cin, cout)
    return jnp.pad(w2d, ((0, kc_pad - k * cin), (0, c_pad - cout))).astype(jnp.bfloat16)


def _gather_fold_xla(feats, nbr, kc_pad, n_pad):
    """Fallback XLA-side gather: materializes [Np, K*Cin] (bf16, gathered in bf16)."""
    n, c = feats.shape
    k = nbr.shape[1]
    feats_bf = feats.astype(jnp.bfloat16)
    padded = jnp.concatenate([feats_bf, jnp.zeros((1, c), jnp.bfloat16)], axis=0)
    xg = padded[nbr].reshape(n, k * c)
    return jnp.pad(xg, ((0, n_pad - n), (0, kc_pad - k * c)))


def build_kernel_map_host(coords, dimension, dilation=1):
    """Host-side hash-map kernel map: nbr[n,k] = index of coords[n]+offset_k, or
    N (sentinel) when absent.  O(N*3^D); precomputed once, passed as an input."""
    coords = np.asarray(coords)
    n = coords.shape[0]
    offsets = np.array(list(itertools.product((-1, 0, 1), repeat=dimension)),
                       dtype=coords.dtype) * dilation
    lut = {tuple(int(v) for v in c): i for i, c in enumerate(coords)}
    nbr = np.full((n, offsets.shape[0]), n, dtype=np.int32)
    for kk, off in enumerate(offsets):
        for i in range(n):
            nbr[i, kk] = lut.get(tuple(int(v) for v in (coords[i] + off)), n)
    return jnp.asarray(nbr)


# ----------------------------------------------------------------------------
# BasicBlock forward (stride=1, dilation per kernel map, downsample=None).
# ----------------------------------------------------------------------------
def basic_block_forward(feats, nbr, params, *, no_relu=False,
                        in_kernel_gather=True, single_buffer_consts=True,
                        max_tile_n=512):
    n, cin = feats.shape
    k_total, _, cout = params["w1"].shape
    assert cin == cout, "stride=1 / no-downsample BasicBlock requires Cin == Cout"
    assert nbr.shape == (n, k_total)

    # TODO(synk): channels are padded to 128 lanes; for Cout << 128 this streams
    # mostly-zero weights/outputs -- pack feature groups or store at true width.
    c_pad = _round_up(cout, 128)
    tile_n = _choose_tile_n(n, max_tile=max_tile_n)
    n_pad = _round_up(n, tile_n)

    w1s, b1 = _fold_bn(params["w1"], params["g1"], params["b1"], params["m1"], params["v1"])
    w2s, b2 = _fold_bn(params["w2"], params["g2"], params["b2"], params["m2"], params["v2"])
    bias1, bias2 = _pad_bias(b1, c_pad), _pad_bias(b2, c_pad)

    if in_kernel_gather:
        # Gather happens inside the kernel from a VMEM-resident bf16 table:
        # the K-times blown-up activations never touch HBM.
        # TODO(synk): for very large N the table no longer fits VMEM; switch to a
        # double-buffered row-DMA gather (make_async_copy) instead.
        t_rows = _round_up(n, 8)
        feats_tab = jnp.pad(feats.astype(jnp.bfloat16),
                            ((0, t_rows - n), (0, c_pad - cin)))
        nbr_pad = jnp.pad(nbr.astype(jnp.int32), ((0, n_pad - n), (0, 0)),
                          constant_values=n)                  # sentinel >= n -> masked
        res = jnp.pad(feats, ((0, n_pad - n), (0, c_pad - cout))).astype(jnp.bfloat16)
        w1_3, w2_3 = _pad_w_per_k(w1s, c_pad), _pad_w_per_k(w2s, c_pad)

        out1 = sparse_conv_bn_gather(nbr_pad, feats_tab, w1_3, bias1, None,
                                     n_valid=n, apply_relu=True,
                                     out_dtype=jnp.bfloat16, tile_n=tile_n,
                                     single_buffer_consts=single_buffer_consts)
        # TODO(synk): conv1->conv2 fusion into one pallas_call (two-phase grid with
        # the intermediate kept in VMEM scratch) would drop the out1 HBM round trip
        # but serializes the N axis (loses v7x 2-TC sharding); left as two calls.
        # TODO(synk): on v7x, fp8 (e4m3) table/weights would halve the remaining
        # activation stream; not applicable to v5e/v6e (int8/int4 MXU path).
        out2 = sparse_conv_bn_gather(nbr_pad, out1, w2_3, bias2, res,
                                     n_valid=n, apply_relu=not no_relu,
                                     out_dtype=jnp.float32, tile_n=tile_n,
                                     single_buffer_consts=single_buffer_consts)
        return out2[:n, :cout]

    # Fallback: XLA-side gather with K folded into the contraction dim.
    kc_pad = _round_up(k_total * cin, 128)
    w1_2, w2_2 = _pad_w_folded(w1s, kc_pad, c_pad), _pad_w_folded(w2s, kc_pad, c_pad)
    res = jnp.pad(feats, ((0, n_pad - n), (0, c_pad - cout))).astype(jnp.bfloat16)

    xg1 = _gather_fold_xla(feats, nbr, kc_pad, n_pad)
    out1 = sparse_conv_bn_folded(xg1, w1_2, bias1, None, apply_relu=True,
                                 out_dtype=jnp.bfloat16, tile_n=tile_n)
    xg2 = _gather_fold_xla(out1[:n, :cout], nbr, kc_pad, n_pad)
    out2 = sparse_conv_bn_folded(xg2, w2_2, bias2, res, apply_relu=not no_relu,
                                 out_dtype=jnp.float32, tile_n=tile_n)
    return out2[:n, :cout]


# ----------------------------------------------------------------------------
# Pure-JAX (f32) reference for correctness checking.
# ----------------------------------------------------------------------------
def _ref_forward(feats, nbr, params, *, no_relu=False):
    def conv(x, w):
        padded = jnp.concatenate([x, jnp.zeros((1, x.shape[1]), x.dtype)], axis=0)
        return jnp.einsum("nki,kio->no", padded[nbr], w)

    def bn(x, g, b, m, v, eps=1e-5):
        return (x - m) / jnp.sqrt(v + eps) * g + b

    out = jnp.maximum(bn(conv(feats, params["w1"]), params["g1"], params["b1"],
                         params["m1"], params["v1"]), 0.0)
    out = bn(conv(out, params["w2"]), params["g2"], params["b2"],
             params["m2"], params["v2"]) + feats
    return out if no_relu else jnp.maximum(out, 0.0)


# ----------------------------------------------------------------------------
if __name__ == "__main__":
    D = 3                      # spatial dimension
    K = 3 ** D                 # 27 kernel offsets
    INPLANES = PLANES = 32     # inplanes == planes, stride=1, no downsample
    GRID = 5                   # 5x5x5 occupied voxel grid -> N = 125 points
    coords = np.array(list(itertools.product(range(GRID), repeat=D)), dtype=np.int32)
    N = coords.shape[0]

    key = jax.random.PRNGKey(0)
    k_feat, k_w1, k_w2, k_g1, k_b1, k_g2, k_b2 = jax.random.split(key, 7)

    feats = jax.random.normal(k_feat, (N, INPLANES), jnp.float32)
    fan = K * INPLANES
    std = 1.0 / (fan ** 0.5)
    params = {
        "w1": jax.random.normal(k_w1, (K, INPLANES, PLANES), jnp.float32) * std,
        "w2": jax.random.normal(k_w2, (K, PLANES, PLANES), jnp.float32) * std,
        "g1": 1.0 + 0.1 * jax.random.normal(k_g1, (PLANES,), jnp.float32),
        "b1": 0.1 * jax.random.normal(k_b1, (PLANES,), jnp.float32),
        "m1": jnp.linspace(-0.2, 0.2, PLANES, dtype=jnp.float32),
        "v1": jnp.linspace(0.8, 1.2, PLANES, dtype=jnp.float32),
        "g2": 1.0 + 0.1 * jax.random.normal(k_g2, (PLANES,), jnp.float32),
        "b2": 0.1 * jax.random.normal(k_b2, (PLANES,), jnp.float32),
        "m2": jnp.linspace(-0.1, 0.1, PLANES, dtype=jnp.float32),
        "v2": jnp.linspace(0.9, 1.1, PLANES, dtype=jnp.float32),
    }

    # Kernel map precomputed host-side (hash map) and passed in as an input.
    nbr = build_kernel_map_host(coords, D)
    ref = _ref_forward(feats, nbr, params, no_relu=False)

    # Preferred config first; fall back only if a Mosaic gather / pipeline-mode
    # constraint rejects it on the current chip / jax version.
    attempts = (
        dict(in_kernel_gather=True, single_buffer_consts=True),
        dict(in_kernel_gather=True, single_buffer_consts=False),
        dict(in_kernel_gather=False, single_buffer_consts=False),
    )
    out = None
    for i, cfg in enumerate(attempts):
        try:
            cand = basic_block_forward(feats, nbr, params, no_relu=False, **cfg)
            cand = jax.block_until_ready(cand)
            assert cand.shape == (N, PLANES)
            # bf16 matmul operands / bf16 intermediate -> loosened tolerance vs f32 ref.
            assert jnp.allclose(cand, ref, atol=5e-2, rtol=5e-2), "mismatch vs reference"
            out = cand
            break
        except Exception:
            if i == len(attempts) - 1:
                raise
    assert out is not None
    print("KERNEL_OK")
</pallas_src>

<mosaic_0001>
module attributes {stable_mosaic.version = 11 : i64} {
  func.func @_folded_conv_kernel(%arg0: i32, %arg1: memref<32x896xbf16, #tpu.memory_space<vmem>>, %arg2: memref<896x128xbf16, #tpu.memory_space<vmem>>, %arg3: memref<1x128xf32, #tpu.memory_space<vmem>>, %arg4: memref<32x128xbf16, #tpu.memory_space<vmem>>) attributes {dimension_semantics = [#tpu.dimension_semantics<parallel>], iteration_bounds = array<i64: 4>, scalar_prefetch = 0 : i64, scratch_operands = 0 : i64, tpu.core_type = #tpu.core_type<tc>, window_params = [{transform_indices = @transform_0, window_bounds = array<i64: 32, 896>}, {pipeline_mode = #tpu.pipeline_mode<synchronous>, transform_indices = @transform_1, window_bounds = array<i64: 896, 128>}, {pipeline_mode = #tpu.pipeline_mode<synchronous>, transform_indices = @transform_2, window_bounds = array<i64: 1, 128>}, {transform_indices = @transform_3, window_bounds = array<i64: 32, 128>}]} {
    %c0 = arith.constant 0 : index
    %c0_0 = arith.constant 0 : index
    %0 = vector.load %arg1[%c0, %c0_0] : memref<32x896xbf16, #tpu.memory_space<vmem>>, vector<32x896xbf16>
    %c0_1 = arith.constant 0 : index
    %c0_2 = arith.constant 0 : index
    %1 = vector.load %arg2[%c0_1, %c0_2] : memref<896x128xbf16, #tpu.memory_space<vmem>>, vector<896x128xbf16>
    %cst = arith.constant dense<0.000000e+00> : vector<32x128xf32>
    %2 = tpu.matmul %0, %1, %cst {dimension_numbers = #tpu.dot_dimension_numbers<[1], [0], [0], [1], [0, 0, 1, 1], [], []>} : vector<32x896xbf16>, vector<896x128xbf16>, vector<32x128xf32> -> vector<32x128xf32>
    %c0_3 = arith.constant 0 : index
    %c0_4 = arith.constant 0 : index
    %3 = vector.load %arg3[%c0_3, %c0_4] : memref<1x128xf32, #tpu.memory_space<vmem>>, vector<1x128xf32>
    %4 = vector.broadcast %3 : vector<1x128xf32> to vector<32x128xf32>
    %5 = arith.addf %2, %4 : vector<32x128xf32>
    %cst_5 = arith.constant 0.000000e+00 : f32
    %6 = vector.broadcast %cst_5 : f32 to vector<32x128xf32>
    %7 = arith.maximumf %5, %6 : vector<32x128xf32>
    %8 = arith.truncf %7 : vector<32x128xf32> to vector<32x128xbf16>
    %c0_6 = arith.constant 0 : index
    %c0_7 = arith.constant 0 : index
    %9 = vector.load %arg4[%c0_6, %c0_7] : memref<32x128xbf16, #tpu.memory_space<vmem>>, vector<32x128xbf16>
    tpu.vector_store %arg4[%c0_6, %c0_7], %8 {strides = array<i32>} : memref<32x128xbf16, #tpu.memory_space<vmem>>, vector<32x128xbf16>,
    return
  }
  func.func @transform_0(%arg0: i32) -> (i32, i32) {
    %c0_i32 = arith.constant 0 : i32
    %c0_i32_0 = arith.constant 0 : i32
    return %arg0, %c0_i32 : i32, i32
  }
  func.func @transform_1(%arg0: i32) -> (i32, i32) {
    %c0_i32 = arith.constant 0 : i32
    %c0_i32_0 = arith.constant 0 : i32
    %c0_i32_1 = arith.constant 0 : i32
    return %c0_i32, %c0_i32_0 : i32, i32
  }
  func.func @transform_2(%arg0: i32) -> (i32, i32) {
    %c0_i32 = arith.constant 0 : i32
    %c0_i32_0 = arith.constant 0 : i32
    %c0_i32_1 = arith.constant 0 : i32
    return %c0_i32, %c0_i32_0 : i32, i32
  }
  func.func @transform_3(%arg0: i32) -> (i32, i32) {
    %c0_i32 = arith.constant 0 : i32
    %c0_i32_0 = arith.constant 0 : i32
    return %arg0, %c0_i32 : i32, i32
  }
}

</mosaic_0001>

<bundles_post_ra>
// kernel: tpu_custom_call.1
= control target key start
LH: loop header
LB: loop body
LE: loop exit
PB: predicated region body
PF: predicated region fallthrough
CT: control target
= control target key end

     0   :  { %8 = vsyncpa [#allocation3], 0  ;;  %s1801_s0 = inlined_call_operand.hbm [shape: bf16[128,896], index: 0, kind: input, shape index: {}]   ;;  %s1802_s1 = inlined_call_operand.hbm [shape: bf16[896,128], index: 1, kind: input, shape index: {}]   ;;  %s1803_s2 = inlined_call_operand.vmem [shape: f32[1,128], index: 2, kind: input, shape index: {}]   ;;  %s1804_s3 = inlined_call_operand.hbm [shape: bf16[128,128], index: 3, kind: output, shape index: {}]  }
   0x1   :  { %10 = vsyncpa [#allocation3 + $0x1], 0 }
   0x2   :  { %11 = vsyncpa [#allocation6], 0 }
   0x3   :  { %12 = vsyncpa [#allocation4], 0 }
   0x4   :  { %14 = vsyncpa [#allocation4 + $0x1], 0  ;;  %s1589_s12 = smov 0   ;;  %s1591_s13 = smov 0  }
   0x5   :  { %s1593_s14 = smov 0   ;;  %s1595_s15 = smov 0  }
   0x6 LB: > { %s1610_s16 = sadd.s32 4294967295, %s1558_s15   ;;  %s1068_s17 = sadd.s32 4294967294, %s1558_s15   ;;  %s1558_s15 = sphi %s1595_s15, %s1823_s15   ;;  %s1554_s14 = sphi %s1593_s14, %s1822_s14   ;;  %s1550_s13 = sphi %s1591_s13, %s1821_s13   ;;  %s1546_s12 = sphi %s1589_s12, %s1820_s12  }
   0x7   : > { %p40_p0 = scmp.ne.s32.totalorder %s1550_s13, %s1546_s12  ;;  %p1805_p1 = scmp.eq.s32.totalorder %s1610_s16, 0 }
   0x8   : > { %p112_p3 = scmp.eq.s32.totalorder %s1068_s17, 3  ;;  %p1069_p5 = scmp.ge.s32.totalorder %s1558_s15, 1 }
   0x9   : > { %p1619_p4 = por %p1805_p1, %p40_p0  ;;  %p119_p7 = scmp.lt.s32.totalorder %s1558_s15, 5 }
   0xa   : > { %p1624_p6 = por %p112_p3, %p40_p0  ;;  %s1560_s21 = smov [#allocation5]  }
   0xb   : > { %s1808_s18 = scalar_select %p1619_p4, 1, 0 }
   0xc   : > { %s1809_s19 = scalar_select %p1624_p6, 1, 0 }
   0xd   : > { %p1629_p8 = pnand %p1069_p5, %p119_p7  ;;  %s131_s22 = sshll.u32 %s1560_s21, 4  ;;  %s132_s22 = int_to_ptr.vmem [resolvable:$true] %s131_s22 }
   0xe   : > { %s1642_s24 = sadd.s32 1, %s1558_s15   ;;  %s27_s25 = sadd.s32 1, %s1554_s14 }
   0xf   : > { %s1810_s20 = scalar_select %p1629_p8, 1, 0 }
  0x10   : > { %p1299_p9 = pneg %p1629_p8  ;;  %s24_s26 = ssub.s32 %s1558_s15, %s1642_s24 }
  0x11   : > { %s1430_s29 = scalar_lea.hbm %s1802_s1, 7168 }
  0x12   : > { %p1637_p10 = pnand %p1299_p9, %p1805_p1  ;;  %p1431_p11 = scmp.ne.s32.totalorder %s1802_s1, %s1430_s29 }
  0x13   : > { %p1437_p3 = scmp.lt.u32.totalorder %s1430_s29, %s1802_s1 }
  0x14   : > { %p1432_p12 = pneg %p1637_p10 }
  0x16   : > { %p1433_p13 = pnand %p1432_p12, %p1431_p11 }
  0x18   : > { %p1434_p0 = pneg %p1433_p13 }
  0x1a   : > { %p1439_p5 = pnand %p1437_p3, %p1434_p0 }
  0x1c   : > { %1442 = shalt.err (!%p1439_p5)
}
  0x1d   : > { %s1443_s7 = scalar_lea.vmem %s132_s22, 7168  ;;  %p1451_p2 = scmp.lt.s32.totalorder %s132_s22, %s132_s22 }
  0x1e   : > { %p1444_p7 = scmp.ne.s32.totalorder %s132_s22, %s1443_s7  ;;  %p1452_p6 = scmp.lt.s32.totalorder %s1443_s7, %s1443_s7 }
  0x20   : > { %p1446_p9 = pnand %p1444_p7, %p1432_p12  ;;  %p1453_p4 = por %p1452_p6, %p1451_p2 }
  0x22   : > { %p1447_p1 = pneg %p1446_p9 }
  0x24   : > { %p1454_p8 = pnand %p1453_p4, %p1447_p1 }
  0x26   : > { %1457 = shalt.err (!%p1454_p8)
}
  0x27   : > { %s1561_s8 = smov 64   ;;  %s1562_s9 = smov 4  }
  0x28   : > { %1302 = dma.hbm_to_vmem [thread:$0]  (!%p1637_p10), %s1802_s1, 7168, %s132_s22, [#allocation6], %s1561_s8, %s1561_s8, %s1562_s9  }
  0x29   : > { %p25_p11 = scmp.eq.s32.totalorder %s24_s26, 0  ;;  %p34_p2 = scmp.ne.s32.totalorder %s1554_s14, %s1550_s13 }
  0x2a   : > { %p35_p1 = scmp.eq.s32.totalorder %s1558_s15, 0  ;;  %p1312_p4 = scmp.lt.s32.totalorder %s1558_s15, 4 }
  0x2b   : > { %s1668_s17 = scalar_select %p25_p11, %s1554_s14, %s27_s25  }
  0x2c   : > { %p36_p6 = por %p35_p1, %p34_p2  ;;  %p1812_p8 = scmp.eq.s32.totalorder %s1610_s16, 3 }
  0x2d   : > { %s148_s27 = sand.u32 1, %s1554_s14   ;;  %s1289_s28 = smul.u32 1792, %s1558_s15 }
  0x2e   : > { %p1672_p12 = por %p1812_p8, %p34_p2  ;;  %s1288_s29 = smul.u32 112, %s148_s27 }
  0x2f   : > { %s1681_s4 = scalar_lea.hbm %s1801_s0, %s1289_s28  ;;  %p1683_p10 = pnand %p1312_p4, %p36_p6 }
  0x30   : > { %s152_s25 = scalar_lea.vmem [#allocation2], %s1288_s29  ;;  %s1689_s5 = scalar_lea.sflag [#allocation3], %s148_s27 }
  0x31   : > { %s160_s26 = sshll.u32 %s152_s25, 4  ;;  %s1458_s6 = scalar_lea.hbm %s1681_s4, 1792  ;;  %s1687_s26 = int_to_ptr.vmem [resolvable:$true] %s160_s26 }
  0x32   : > { %p1459_p13 = scmp.ne.s32.totalorder %s1681_s4, %s1458_s6  ;;  %p1460_p0 = pneg %p1683_p10 }
  0x33   : > { %s1463_s9 = scalar_lea.hbm %s1801_s0, 7168  ;;  %p1464_p7 = scmp.lt.u32.totalorder %s1681_s4, %s1801_s0 }
  0x34   : > { %p1461_p3 = pnand %p1460_p0, %p1459_p13  ;;  %p1465_p9 = scmp.lt.u32.totalorder %s1463_s9, %s1458_s6 }
  0x35   : > { %p1467_p2 = scmp.lt.u32.totalorder %s1458_s6, %s1681_s4 }
  0x36   : > { %p1462_p5 = pneg %p1461_p3  ;;  %p1466_p11 = por %p1465_p9, %p1464_p7 }
  0x38   : > { %p1468_p1 = por %p1467_p2, %p1466_p11 }
  0x3a   : > { %p1469_p4 = pnand %p1468_p1, %p1462_p5 }
  0x3c   : > { %1472 = shalt.err (!%p1469_p4)
}
  0x3d   : > { %s1473_s27 = scalar_lea.vmem %s1687_s26, 1792  ;;  %s1563_s28 = smov [#allocation2]  }
  0x3e   : > { %p1474_p6 = scmp.ne.s32.totalorder %s1687_s26, %s1473_s27  ;;  %s1478_s29 = sshll.u32 %s1563_s28, 4  ;;  %s1479_s29 = int_to_ptr.vmem [resolvable:$false] %s1478_s29 }
  0x3f   : > { %s1480_s23 = scalar_lea.vmem %s1479_s29, 3584  ;;  %p1481_p3 = scmp.lt.s32.totalorder %s1687_s26, %s1479_s29 }
  0x40   : > { %p1476_p8 = pnand %p1474_p6, %p1460_p0  ;;  %p1482_p7 = scmp.lt.s32.totalorder %s1480_s23, %s1473_s27 }
  0x42   : > { %p1477_p13 = pneg %p1476_p8  ;;  %p1483_p9 = por %p1482_p7, %p1481_p3 }
  0x44   : > { %p1484_p11 = pnand %p1483_p9, %p1477_p13 }
  0x46   : > { %1487 = shalt.err (!%p1484_p11)
}
  0x47   : > { %s1564_s30 = smov 448   ;;  %s1565_s25 = smov 28  }
  0x48   : > { %1306 = dma.hbm_to_vmem [thread:$0]  (!%p1683_p10), %s1681_s4, 1792, %s1687_s26, %s1689_s5, %s1564_s30, %s1564_s30, %s1565_s25  }
  0x49   : > { %p1815_p0 = scmp.ne.s32.totalorder %s1810_s20, 0 }
  0x4a   : > { %s1720_s6 = sand.u32 (!%p1815_p0), 1, %s1550_s13   ;;  %p1816_p5 = scmp.ne.s32.totalorder (!%p1815_p0), %s1808_s18, 0 }
  0x4b   : > { %172 = sbr.rel (%p1815_p0) target bundleno = 399 (0x18f), region = 32  ;;  %s175_s8 = scalar_lea.sflag (!%p1815_p0), [#allocation3], %s1720_s6 }
  0x4c   : > { %s1290_s7 = smul.u32 (!%p1815_p0), 112, %s1720_s6 }
  0x4e   : > { %s1724_s9 = scalar_lea.vmem (!%p1815_p0), [#allocation2], %s1290_s7 }
  0x52   : > { %1533 = dma.done.wait (%p1816_p5), %s175_s8, 1792  }
  0x53   : > { %1535 = vsyncadd (%p1816_p5), %s175_s8, 4294965504  ;;  %p1817_p10 = scmp.eq.s32.totalorder %s1610_s16, 0 }
  0x55   : > { %1537 = dma.done.wait (%p1817_p10), [#allocation6], 7168   ;;  %p1818_p2 = pmov %p1817_p10 }
  0x56   : > { %v1354_v0 = vld [vmem:[#allocation5 + $0x40] sm:$0xff]   ;;  %v1358_v4 = vld [vmem:[#allocation5 + $0x48] sm:$0xff]   ;;  %v1362_v8 = vld [vmem:[#allocation5 + $0x50] sm:$0xff]   ;;  %s1077_s4 = sshll.u32 %s1720_s6, 4  ;;  %s1162_s5 = sshll.u32 %s1610_s16, 8 }
  0x57   : > { %1539 = vsyncadd (%p1818_p2), [#allocation6], 4294960128  ;;  %v1355_v1 = vld [vmem:[#allocation5] sm:$0xff]   ;;  %1174 = vmatprep.subr.bf16.mxu0 %v1354_v0  ;;  %v1359_v5 = vld [vmem:[#allocation5 + $0x8] sm:$0xff]   ;;  %s204_s22 = scalar_lea.vmem [#allocation7], %s1077_s4  ;;  %s1758_s27 = scalar_lea.hbm %s1804_s3, %s1162_s5 }
  0x58   : > { %v1356_v2 = vld [vmem:[#allocation5 + $0xc0] sm:$0xff]   ;;  %1175 = vmatpush3.bf16.msra.mxu0 %v1355_v1  ;;  %v1360_v6 = vld [vmem:[#allocation5 + $0xc8] sm:$0xff]   ;;  %v1363_v9 = vld [vmem:[#allocation5 + $0x10] sm:$0xff]   ;;  %s985_s26 = sshll.u32 %s204_s22, 4  ;;  %s972_s28 = scalar_lea.sflag [#allocation4], %s1720_s6  ;;  %s1753_s26 = int_to_ptr.vmem [resolvable:$true] %s985_s26 }
  0x59   : > { %v1357_v3 = vld [vmem:[#allocation5 + $0x80] sm:$0xff]   ;;  %1202 = vmatprep.subr.bf16.mxu1 %v1356_v2  ;;  %1176 = vmatprep.subr.bf16.mxu0 %v1358_v4  ;;  %v1361_v7 = vld [vmem:[#allocation5 + $0x88] sm:$0xff]   ;;  %v1364_v10 = vld [vmem:[#allocation5 + $0xd0] sm:$0xff]   ;;  %s1488_s29 = scalar_lea.vmem %s1753_s26, 256  ;;  %s1566_s16 = smov [#allocation7]  }
  0x5a   : > { %1203 = vmatpush3.bf16.msra.mxu1 %v1357_v3  ;;  %v1365_v11 = vld [vmem:[#allocation5 + $0x90] sm:$0xff]   ;;  %v1366_v12 = vld [vmem:[#allocation5 + $0x58] sm:$0xff]   ;;  %v1370_v16 = vld [vmem:[#allocation5 + $0x60] sm:$0xff]   ;;  %p1489_p1 = scmp.ne.s32.totalorder %s1753_s26, %s1488_s29  ;;  %s1492_s23 = sshll.u32 %s1566_s16, 4  ;;  %s1493_s23 = int_to_ptr.vmem [resolvable:$false] %s1492_s23 }
  0x5b   : > { %1204 = vmatprep.subr.bf16.mxu1 %v1360_v6  ;;  %v1367_v13 = vld [vmem:[#allocation5 + $0x18] sm:$0xff]   ;;  %v1371_v17 = vld [vmem:[#allocation5 + $0x20] sm:$0xff]   ;;  %v1374_v20 = vld [vmem:[#allocation5 + $0x68] sm:$0xff]   ;;  %s1494_s30 = scalar_lea.vmem %s1493_s23, 512  ;;  %p1495_p8 = scmp.lt.s32.totalorder %s1753_s26, %s1493_s23 }
  0x5c   : > { %1177 = vmatpush3.bf16.msra.mxu0 %v1359_v5  ;;  %v1368_v14 = vld [vmem:[#allocation5 + $0xd8] sm:$0xff]   ;;  %v1372_v18 = vld [vmem:[#allocation5 + $0xe0] sm:$0xff]   ;;  %v1375_v21 = vld [vmem:[#allocation5 + $0x28] sm:$0xff]   ;;  %p1490_p4 = pnand %p1489_p1, %p1672_p12  ;;  %p1496_p13 = scmp.lt.s32.totalorder %s1494_s30, %s1488_s29 }
  0x5d   : > { %1178 = vmatprep.subr.bf16.mxu0 %v1362_v8  ;;  %v1369_v15 = vld [vmem:[#allocation5 + $0x98] sm:$0xff]   ;;  %v1373_v19 = vld [vmem:[#allocation5 + $0xa0] sm:$0xff]   ;;  %v1376_v22 = vld [vmem:[#allocation5 + $0xe8] sm:$0xff]  }
  0x5e   : > { %1205 = vmatpush3.bf16.msra.mxu1 %v1361_v7  ;;  %v1377_v23 = vld [vmem:[#allocation5 + $0xa8] sm:$0xff]   ;;  %v1378_v24 = vld [vmem:[#allocation5 + $0x70] sm:$0xff]   ;;  %v1382_v28 = vld [vmem:[#allocation5 + $0x78] sm:$0xff]   ;;  %p1491_p6 = pneg %p1490_p4  ;;  %p1497_p3 = por %p1496_p13, %p1495_p8 }
  0x5f   : > { %1206 = vmatprep.subr.bf16.mxu1 %v1364_v10  ;;  %v1379_v25 = vld [vmem:[#allocation5 + $0x30] sm:$0xff]   ;;  %v1383_v29 = vld [vmem:[#allocation5 + $0x38] sm:$0xff]   ;;  %v1389_v34 = vld [vmem:[#allocation5 + $0x140] sm:$0xff]  }
  0x60   : > { %1179 = vmatpush3.bf16.msra.mxu0 %v1363_v9  ;;  %v1380_v26 = vld [vmem:[#allocation5 + $0xf0] sm:$0xff]   ;;  %v1384_v30 = vld [vmem:[#allocation5 + $0xf8] sm:$0xff]   ;;  %v1393_v37 = vld [vmem:[#allocation5 + $0x100] sm:$0xff]   ;;  %p1498_p7 = pnand %p1497_p3, %p1491_p6 }
  0x61   : > { %1180 = vmatprep.subr.bf16.mxu0 %v1366_v12  ;;  %v1381_v27 = vld [vmem:[#allocation5 + $0xb0] sm:$0xff]   ;;  %v1388_v33 = vld [vmem:[#allocation5 + $0xb8] sm:$0xff]   ;;  %v1394_v38 = vld [vmem:[#allocation5 + $0x148] sm:$0xff]  }
  0x62   : > { %1207 = vmatpush3.bf16.msra.mxu1 %v1365_v11  ;;  %v1385_v31 = vld [vmem:[%s1724_s9] ss:$28 sps:$4 sm:$0xff]   ;;  %v1390_v35 = vld [vmem:[%s1724_s9 + $0x8] ss:$28 sps:$4 sm:$0xff]   ;;  %v1410_v53 = vld [vmem:[%s1724_s9 + $0x38] ss:$28 sps:$4 sm:$0xff]  }
  0x63   : > { %1208 = vmatprep.subr.bf16.mxu1 %v1368_v14  ;;  %v1387_v32 = vld [vmem:[%s1724_s9 + $0x4] ss:$28 sps:$4 sm:$0xff]   ;;  %v1392_v36 = vld [vmem:[%s1724_s9 + $0xc] ss:$28 sps:$4 sm:$0xff]   ;;  %v1406_v50 = vld [vmem:[%s1724_s9 + $0x3c] ss:$28 sps:$4 sm:$0xff]  }
  0x64   : > { %1181 = vmatpush3.bf16.msra.mxu0 %v1367_v13  ;;  %783 = vmatprep.mubr.bf16.mxu0 %v1387_v32  ;;  %v1395_v39 = vld [vmem:[#allocation5 + $0x180] sm:$0xff]   ;;  %v1396_v40 = vld [vmem:[#allocation5 + $0x108] sm:$0xff]   ;;  %v1397_v41 = vld [vmem:[#allocation5 + $0x150] sm:$0xff]  }
  0x65   : > { %1182 = vmatprep.subr.bf16.mxu0 %v1370_v16  ;;  %832 = vmatprep.mubr.bf16.mxu1 %v1392_v36  ;;  %v1398_v42 = vld [vmem:[#allocation5 + $0x188] sm:$0xff]   ;;  %v1399_v43 = vld [vmem:[#allocation5 + $0x110] sm:$0xff]   ;;  %v1400_v44 = vld [vmem:[#allocation5 + $0x158] sm:$0xff]  }
  0x66   : > { %1209 = vmatpush3.bf16.msra.mxu1 %v1369_v15  ;;  %v1401_v45 = vld [vmem:[#allocation5 + $0x190] sm:$0xff]   ;;  %v1402_v46 = vld [vmem:[#allocation5 + $0x118] sm:$0xff]   ;;  %v1403_v47 = vld [vmem:[#allocation5 + $0x160] sm:$0xff]  }
  0x67   : > { %1210 = vmatprep.subr.bf16.mxu1 %v1372_v18  ;;  %v1404_v48 = vld [vmem:[#allocation5 + $0x198] sm:$0xff]   ;;  %v1405_v49 = vld [vmem:[#allocation5 + $0x120] sm:$0xff]   ;;  %v1408_v51 = vld [vmem:[#allocation5 + $0x168] sm:$0xff]  }
  0x68   : > { %1183 = vmatpush3.bf16.msra.mxu0 %v1371_v17  ;;  %v1409_v52 = vld [vmem:[#allocation5 + $0x1a0] sm:$0xff]   ;;  %v1411_v54 = vld [vmem:[#allocation5 + $0x128] sm:$0xff]   ;;  %v1415_v57 = vld [vmem:[#allocation5 + $0x170] sm:$0xff]  }
  0x69   : > { %1184 = vmatprep.subr.bf16.mxu0 %v1374_v20  ;;  %v1412_v55 = vld [vmem:[%s1724_s9 + $0x44] ss:$28 sps:$4 sm:$0xff]   ;;  %v1416_v58 = vld [vmem:[#allocation5 + $0x1a8] sm:$0xff]   ;;  %v1418_v60 = vld [vmem:[#allocation5 + $0x178] sm:$0xff]  }
  0x6a   : > { %1211 = vmatpush3.bf16.msra.mxu1 %v1373_v19  ;;  %v1414_v56 = vld [vmem:[%s1724_s9 + $0x40] ss:$28 sps:$4 sm:$0xff]   ;;  %v1423_v63 = vld [vmem:[%s1724_s9 + $0x14] ss:$28 sps:$4 sm:$0xff]   ;;  %v1427_v3 = vld [vmem:[%s1724_s9 + $0x4c] ss:$28 sps:$4 sm:$0xff]  }
  0x6b   : > { %1212 = vmatprep.subr.bf16.mxu1 %v1376_v22  ;;  %v1417_v59 = vld [vmem:[#allocation5 + $0x130] sm:$0xff]   ;;  %v1420_v62 = vld [vmem:[#allocation5 + $0x138] sm:$0xff]   ;;  %v1078_v7 = vld [vmem:[%s1803_s2] ss:$0 sm:$0xff] }
  0x6c   : > { %1185 = vmatpush3.bf16.msra.mxu0 %v1375_v21  ;;  %v1419_v61 = vld [vmem:[#allocation5 + $0x1b0] sm:$0xff]   ;;  %v1424_v0 = vld [vmem:[#allocation5 + $0x1b8] sm:$0xff]  }
  0x6d   : > { %1186 = vmatprep.subr.bf16.mxu0 %v1378_v24  ;;  %v1425_v1 = vld [vmem:[%s1724_s9 + $0x18] ss:$28 sps:$4 sm:$0xff]   ;;  %v1421_v2 = vld [vmem:[%s1724_s9 + $0x10] ss:$28 sps:$4 sm:$0xff]   ;;  %v1429_v5 = vld [vmem:[%s1724_s9 + $0x48] ss:$28 sps:$4 sm:$0xff]  }
  0x6e   : > { %1213 = vmatpush3.bf16.msra.mxu1 %v1377_v23  ;;  %v1426_v4 = vld [vmem:[%s1724_s9 + $0x50] ss:$28 sps:$4 sm:$0xff]  }
  0x6f   : > { %1214 = vmatprep.subr.bf16.mxu1 %v1380_v26 }
  0x70   : > { %1187 = vmatpush3.bf16.msra.mxu0 %v1379_v25 }
  0x71   : > { %1188 = vmatprep.subr.bf16.mxu0 %v1382_v28 }
  0x72   : > { %1215 = vmatpush3.bf16.msra.mxu1 %v1381_v27 }
  0x73   : > { %1216 = vmatprep.subr.bf16.mxu1 %v1384_v30 }
  0x74   : > { %1189 = vmatpush3.bf16.msra.mxu0 %v1383_v29 }
  0x75   : > { %1230 = vmatprep.subr.bf16.mxu0 %v1389_v34 }
  0x76   : > { %1217 = vmatpush3.bf16.msra.mxu1 %v1388_v33 }
  0x77   : > { %784 = vmatmul.mubr.bf16.vlgmr.msra.gmra.mrb[0].mxu0 %v1385_v31  ;;  %1268 = vmatprep.subr.bf16.mxu1 %v1395_v39 }
  0x78   : > { %1231 = vmatpush3.bf16.msra.mxu0 %v1393_v37  ;;  %791 = vmatprep.mubr.bf16.mxu0 %v1406_v50 }
  0x79   : > { %833 = vmatmul.mubr.bf16.vlgmr.msra.gmra.mrb[0].mxu1 %v1390_v35  ;;  %1232 = vmatprep.subr.bf16.mxu0 %v1394_v38 }
  0x7a   : > { %1269 = vmatpush3.bf16.msra.mxu1 %v1395_v39  ;;  %840 = vmatprep.mubr.bf16.mxu1 %v1412_v55 }
  0x7b   : > { %1270 = vmatprep.subr.bf16.mxu1 %v1398_v42 }
  0x7c   : > { %1233 = vmatpush3.bf16.msra.mxu0 %v1396_v40 }
  0x7d   : > { %1234 = vmatprep.subr.bf16.mxu0 %v1397_v41 }
  0x7e   : > { %1271 = vmatpush3.bf16.msra.mxu1 %v1398_v42 }
  0x7f   : > { %1272 = vmatprep.subr.bf16.mxu1 %v1401_v45  ;;  %792 = vmatmul.mubr.bf16.gmra.mrb[4].mxu0 %v1410_v53 }
  0x80   : > { %1235 = vmatpush3.bf16.msra.mxu0 %v1399_v43  ;;  %881 = vmatprep.mubr.bf16.mxu0 %v1423_v63 }
  0x81   : > { %1236 = vmatprep.subr.bf16.mxu0 %v1400_v44  ;;  %841 = vmatmul.mubr.bf16.gmra.mrb[4].mxu1 %v1414_v56 }
  0x82   : > { %1273 = vmatpush3.bf16.msra.mxu1 %v1401_v45  ;;  %1284 = vmatprep.mubr.bf16.mxu1 %v1425_v1 }
  0x83   : > { %1274 = vmatprep.subr.bf16.mxu1 %v1404_v48 }
  0x84   : > { %1237 = vmatpush3.bf16.msra.mxu0 %v1402_v46 }
  0x85   : > { %1238 = vmatprep.subr.bf16.mxu0 %v1403_v47 }
  0x86   : > { %1275 = vmatpush3.bf16.msra.mxu1 %v1404_v48 }
  0x87   : > { %1276 = vmatprep.subr.bf16.mxu1 %v1409_v52 }
  0x88   : > { %1239 = vmatpush3.bf16.msra.mxu0 %v1405_v49 }
  0x89   : > { %1240 = vmatprep.subr.bf16.mxu0 %v1408_v51 }
  0x8a   : > { %1277 = vmatpush3.bf16.msra.mxu1 %v1409_v52 }
  0x8b   : > { %1278 = vmatprep.subr.bf16.mxu1 %v1416_v58 }
  0x8c   : > { %1241 = vmatpush3.bf16.msra.mxu0 %v1411_v54 }
  0x8d   : > { %1242 = vmatprep.subr.bf16.mxu0 %v1415_v57 }
  0x8e   : > { %1279 = vmatpush3.bf16.msra.mxu1 %v1416_v58 }
  0x8f   : > { %1280 = vmatprep.subr.bf16.mxu1 %v1419_v61 }
  0x90   : > { %1243 = vmatpush3.bf16.msra.mxu0 %v1417_v59 }
  0x91   : > { %1244 = vmatprep.subr.bf16.mxu0 %v1418_v60 }
  0x92   : > { %1281 = vmatpush3.bf16.msra.mxu1 %v1419_v61 }
  0x93   : > { %1282 = vmatprep.subr.bf16.mxu1 %v1424_v0 }
  0x94   : > { %1245 = vmatpush3.bf16.msra.mxu0 %v1420_v62 }
  0x96   : > { %1283 = vmatpush3.bf16.msra.mxu1 %v1424_v0 }
  0x97   : > { %882 = vmatmul.mubr.bf16.vlgmr.msra.gmra.mrb[8].mxu0 %v1421_v2 }
  0x98   : > { %889 = vmatprep.mubr.bf16.mxu0 %v1427_v3 }
  0x99   : > { %1285 = vmatmul.mubr.bf16.vlgmr.msra.gmra.mrb[8].mxu1 %v1426_v4 }
  0x9f   : > { %890 = vmatmul.mubr.bf16.gmra.mrb[12].mxu0 %v1429_v5 }
 0x14a   : > { %v1190_v6 = vpop.f32.mrb[0].mxu0 }
 0x14b   : > { %v1191_v8 = vpop.f32.mrb[1].mxu0 }
 0x14c   : > { %v1192_v9 = vadd.f32 %v1191_v8, %v1190_v6  ;;  %v1193_v10 = vpop.f32.mrb[2].mxu0  ;;  %v1218_v11 = vpop.f32.mrb[0].mxu1 }
 0x14d   : > { %v1194_v12 = vpop.f32.mrb[3].mxu0  ;;  %v1219_v15 = vpop.f32.mrb[1].mxu1 }
 0x14e   : > { %v786_v13 = vadd.f32 %v1192_v9, %v1078_v7  ;;  %v1195_v14 = vadd.f32 %v1194_v12, %v1193_v10  ;;  %v1220_v16 = vadd.f32 %v1219_v15, %v1218_v11  ;;  %v1221_v17 = vpop.f32.mrb[2].mxu1 }
 0x14f   : > { %v1222_v19 = vpop.f32.mrb[3].mxu1 }
 0x150   : > { %v789_v18 = vadd.f32 %v1195_v14, %v1078_v7  ;;  %v835_v20 = vadd.f32 %v1220_v16, %v786_v13  ;;  %v1223_v21 = vadd.f32 %v1222_v19, %v1221_v17 }
 0x152   : > { %v838_v22 = vadd.f32 %v1223_v21, %v789_v18  ;;  %v1196_v23 = vpop.f32.mrb[4].mxu0 }
 0x153   : > { %v1197_v24 = vpop.f32.mrb[5].mxu0 }
 0x154   : > { %v1198_v25 = vadd.f32 %v1197_v24, %v1196_v23  ;;  %v1199_v26 = vpop.f32.mrb[6].mxu0  ;;  %v1224_v27 = vpop.f32.mrb[4].mxu1 }
 0x155   : > { %v1200_v28 = vpop.f32.mrb[7].mxu0  ;;  %v1225_v31 = vpop.f32.mrb[5].mxu1 }
 0x156   : > { %v794_v29 = vadd.f32 %v1198_v25, %v1078_v7  ;;  %v1201_v30 = vadd.f32 %v1200_v28, %v1199_v26  ;;  %v1226_v32 = vadd.f32 %v1225_v31, %v1224_v27  ;;  %v1227_v33 = vpop.f32.mrb[6].mxu1 }
 0x157   : > { %v1228_v35 = vpop.f32.mrb[7].mxu1 }
 0x158   : > { %v797_v34 = vadd.f32 %v1201_v30, %v1078_v7  ;;  %v843_v36 = vadd.f32 %v1226_v32, %v794_v29  ;;  %v1229_v37 = vadd.f32 %v1228_v35, %v1227_v33 }
 0x15a   : > { %v846_v38 = vadd.f32 %v1229_v37, %v797_v34 }
 0x16a   : > { %v1246_v39 = vpop.f32.mrb[8].mxu0 }
 0x16b   : > { %v1247_v40 = vpop.f32.mrb[9].mxu0 }
 0x16c   : > { %v1248_v41 = vadd.f32 %v1247_v40, %v1246_v39  ;;  %v1249_v42 = vpop.f32.mrb[10].mxu0  ;;  %v1286_v44 = vpop.f32.mrb[8].mxu1 }
 0x16d   : > { %v1250_v43 = vpop.f32.mrb[11].mxu0  ;;  %v932_v47 = vpop.f32.mrb[9].mxu1 }
 0x16e   : > { %v1251_v45 = vadd.f32 %v1250_v43, %v1249_v42  ;;  %v884_v46 = vadd.f32 %v1248_v41, %v835_v20  ;;  %v1287_v48 = vpop.f32.mrb[10].mxu1 }
 0x16f   : > { %v935_v51 = vpop.f32.mrb[11].mxu1 }
 0x170   : > { %v933_v49 = vadd.f32 %v932_v47, %v884_v46  ;;  %v887_v50 = vadd.f32 %v1251_v45, %v838_v22 }
 0x172   : > { %v936_v52 = vadd.f32 %v935_v51, %v887_v50  ;;  %v1252_v53 = vpop.f32.mrb[12].mxu0  ;;  %v947_v55 = vmax.f32 %v933_v49, 0.0 }
 0x173   : > { %v1253_v54 = vpop.f32.mrb[13].mxu0 }
 0x174   : > { %v948_v56 = vmax.f32 %v936_v52, 0.0  ;;  %v1254_v57 = vadd.f32 %v1253_v54, %v1252_v53  ;;  %v1255_v58 = vpop.f32.mrb[14].mxu0 }
 0x175   : > { %v1256_v59 = vpop.f32.mrb[15].mxu0 }
 0x176   : > { %v1166_v60 = vpack.c.bf16 %v948_v56, %v947_v55  ;;  %v892_v61 = vadd.f32 %v1254_v57, %v843_v36  ;;  %v1257_v62 = vadd.f32 %v1256_v59, %v1255_v58 }
 0x178   : > { %1167 = vst [vmem:[%s204_s22] sm:$0xff] %v1166_v60   ;;  %v941_v63 = vadd.f32 %v1286_v44, %v892_v61  ;;  %v895_v0 = vadd.f32 %v1257_v62, %v846_v38 }
 0x17a   : > { %v944_v1 = vadd.f32 %v1287_v48, %v895_v0  ;;  %v949_v2 = vmax.f32 %v941_v63, 0.0 }
 0x17c   : > { %v950_v3 = vmax.f32 %v944_v1, 0.0 }
 0x17e   : > { %v1171_v4 = vpack.c.bf16 %v950_v3, %v949_v2 }
 0x180   : > { %1173 = vst [vmem:[%s204_s22 + $0x8] sm:$0xff] %v1171_v4  }
 0x181   : > { %1501 = shalt.err (!%p1498_p7)
}
 0x182   : > { %s1502_s25 = scalar_lea.hbm %s1758_s27, 256  ;;  %s1506_s9 = scalar_lea.hbm %s1804_s3, 1024 }
 0x183   : > { %p1503_p9 = scmp.ne.s32.totalorder %s1758_s27, %s1502_s25  ;;  %p1507_p5 = scmp.lt.u32.totalorder %s1758_s27, %s1804_s3 }
 0x184   : > { %p1508_p10 = scmp.lt.u32.totalorder %s1506_s9, %s1502_s25  ;;  %p1510_p1 = scmp.lt.u32.totalorder %s1502_s25, %s1758_s27 }
 0x185   : > { %p1504_p11 = pnand %p1503_p9, %p1672_p12 }
 0x186   : > { %p1509_p2 = por %p1508_p10, %p1507_p5 }
 0x187   : > { %p1505_p0 = pneg %p1504_p11 }
 0x188   : > { %p1511_p4 = por %p1510_p1, %p1509_p2 }
 0x18a   : > { %p1512_p6 = pnand %p1511_p4, %p1505_p0 }
 0x18c   : > { %1515 = shalt.err (!%p1512_p6)
}
 0x18d   : > { %s1567_s4 = smov 64   ;;  %s1568_s22 = smov 4  }
 0x18e   : > { %1297 = dma.vmem_to_hbm [thread:$0]  (%p1672_p12), %s1753_s26, 256, %s1758_s27, %s972_s28, %s1567_s4, %s1567_s4, %s1568_s22  }
 0x18f PF: > { %p1314_p8 = scmp.ge.s32.totalorder %s1558_s15, 2  ;;  %s1000_s5 = sand.u32 1, %s1546_s12  }
 0x190   : > { %p1819_p13 = scmp.ne.s32.totalorder %s1809_s19, 0  ;;  %s1001_s10 = scalar_lea.sflag [#allocation4], %s1000_s5 }
 0x192   : > { %p1308_p3 = pnand %p1314_p8, %p1819_p13 }
 0x194   : > { %1541 = dma.done.wait (!%p1308_p3), %s1001_s10, 256  }
 0x195   : > { %1543 = vsyncadd (!%p1308_p3), %s1001_s10, 4294967040  ;;  %p17_p7 = scmp.ge.s32.totalorder %s1642_s24, 6   ;;  %s1820_s12 = smov %s1550_s13 }
 0x196   : > { %s1821_s13 = smov %s1554_s14  ;;  %s1822_s14 = smov %s1668_s17 }
 0x197   : > { %s1823_s15 = smov %s1642_s24  ;;  %19 = sbr.rel (!%p17_p7) target bundleno = 6 (0x6), region = 81 }
 0x19e   :  { %1006 = vsyncpa [#allocation3], 1 }
 0x19f   :  { %1008 = vsyncpa [#allocation3 + $0x1], 1 }
 0x1a0   :  { %1009 = vsyncpa [#allocation6], 1 }
 0x1a1   :  { %1010 = vsyncpa [#allocation4], 1 }
 0x1a2   :  { %1012 = vsyncpa [#allocation4 + $0x1], 1 }

</bundles_post_ra>
